<compile_context>
chip_gen: v7x
topology: tpu7x:2x2x1
jax: 0.10.0
libtpu: 0.0.40
codegen_flags: <defaults>
</compile_context>

<pallas_src>
import functools

import jax
import jax.numpy as jnp
from jax.experimental import pallas as pl
from jax.experimental.pallas import tpu as pltpu

ALPHA = 0.1


def _smoothed_nll_kernel(out_ref, lab_ref, row_loss_ref):
    """Per-row smoothed negative log-likelihood for one (TN, C) tile."""
    x = out_ref[...].astype(jnp.float32)            # (TN, C) logits, f32 math
    tn, c = x.shape
    labels = lab_ref[...]                           # (TN, 1) int32

    # Numerically stable log-softmax pieces (class axis = lane axis).
    m = jnp.max(x, axis=1, keepdims=True)           # (TN, 1)
    shifted = x - m                                 # (TN, C)
    lse = jnp.log(jnp.sum(jnp.exp(shifted), axis=1, keepdims=True))  # (TN, 1)

    # log_prob at the true class, via a masked row-sum (no full log_prob kept).
    col = jax.lax.broadcasted_iota(jnp.int32, (tn, c), 1)
    shifted_at_label = jnp.sum(
        jnp.where(col == labels, shifted, 0.0), axis=1, keepdims=True)
    lp_label = shifted_at_label - lse                                 # (TN, 1)

    # Row-sum of log_prob = rowsum(shifted) - C * lse.
    rowsum_lp = jnp.sum(shifted, axis=1, keepdims=True) - jnp.float32(c) * lse

    on = jnp.float32(1.0 - ALPHA)
    off = jnp.float32(ALPHA / (c - 1))
    per_row = on * lp_label + off * (rowsum_lp - lp_label)            # (TN, 1)

    row_loss_ref[...] = -per_row


def _choose_tile_rows(n, c, itemsize, vmem_budget_bytes=8 * 1024 * 1024):
    """Rows per tile: fits VMEM (double-buffered) on all generations."""
    rows = vmem_budget_bytes // max(1, c * itemsize)
    rows = max(8, (rows // 8) * 8)        # sublane alignment
    rows = min(rows, 512)                 # big tiles amortize per-step overhead
    n8 = ((n + 7) // 8) * 8
    return int(min(rows, n8))


@functools.partial(jax.jit, static_argnames=())
def loss_label_smoothing(outputs, labels):
    """outputs: (N, C) float logits (f32 or bf16); labels: (N,) int class ids."""
    n, c = outputs.shape
    itemsize = jnp.dtype(outputs.dtype).itemsize
    tn = _choose_tile_rows(n, c, itemsize)
    n_pad = pl.cdiv(n, tn) * tn
    num_tiles = n_pad // tn

    labels2d = labels.astype(jnp.int32).reshape(n, 1)
    if n_pad != n:
        outputs = jnp.pad(outputs, ((0, n_pad - n), (0, 0)))
        labels2d = jnp.pad(labels2d, ((0, n_pad - n), (0, 0)))

    cost = pl.CostEstimate(
        flops=6 * n_pad * c,
        transcendentals=n_pad * c + n_pad,
        bytes_accessed=n_pad * c * itemsize + n_pad * 4 + n_pad * 4,
    )

    row_losses = pl.pallas_call(
        _smoothed_nll_kernel,
        out_shape=jax.ShapeDtypeStruct((n_pad, 1), jnp.float32),
        grid_spec=pltpu.PrefetchScalarGridSpec(
            num_scalar_prefetch=0,
            grid=(num_tiles,),
            in_specs=[
                pl.BlockSpec((tn, c), lambda i: (i, 0)),
                pl.BlockSpec((tn, 1), lambda i: (i, 0)),
            ],
            out_specs=pl.BlockSpec((tn, 1), lambda i: (i, 0)),
        ),
        compiler_params=pltpu.CompilerParams(
            dimension_semantics=("parallel",),
            vmem_limit_bytes=32 * 1024 * 1024,
        ),
        cost_estimate=cost,
    )(outputs, labels2d)

    # Final tiny reduction (drop padded rows), negate already done per-row.
    return jnp.sum(row_losses[:n, 0]) / jnp.float32(n)


def _reference(outputs, labels):
    n, c = outputs.shape
    log_prob = jax.nn.log_softmax(outputs.astype(jnp.float32), axis=1)
    smoothed = jnp.full((n, c), ALPHA / (c - 1), dtype=jnp.float32)
    smoothed = smoothed.at[jnp.arange(n), labels].set(1.0 - ALPHA)
    return -jnp.sum(log_prob * smoothed) / n


if __name__ == "__main__":
    key = jax.random.PRNGKey(0)
    k1, k2, k3, k4 = jax.random.split(key, 4)

    # Small case (single tile, matches the module's toy shapes).
    N, C = 8, 32
    outputs = jax.random.normal(k1, (N, C), dtype=jnp.float32)
    labels = jax.random.randint(k2, (N,), 0, C, dtype=jnp.int32)
    loss = loss_label_smoothing(outputs, labels)
    jax.block_until_ready(loss)
    ref = _reference(outputs, labels)
    assert jnp.allclose(loss, ref, atol=1e-5, rtol=1e-5), (loss, ref)

    # Multi-tile case (exercises grid pipelining + row padding).
    N2, C2 = 1200, 40
    outputs2 = jax.random.normal(k3, (N2, C2), dtype=jnp.float32)
    labels2 = jax.random.randint(k4, (N2,), 0, C2, dtype=jnp.int32)
    loss2 = loss_label_smoothing(outputs2, labels2)
    jax.block_until_ready(loss2)
    ref2 = _reference(outputs2, labels2)
    assert jnp.allclose(loss2, ref2, atol=1e-4, rtol=1e-5), (loss2, ref2)

    # bf16 logits at the call boundary (kernel math stays f32).
    outputs_bf16 = outputs2.astype(jnp.bfloat16)
    loss3 = loss_label_smoothing(outputs_bf16, labels2)
    jax.block_until_ready(loss3)
    ref3 = _reference(outputs_bf16.astype(jnp.float32), labels2)
    assert jnp.allclose(loss3, ref3, atol=1e-4, rtol=1e-4), (loss3, ref3)

    print("KERNEL_OK")
</pallas_src>

<mosaic_0001>
module attributes {stable_mosaic.version = 11 : i64} {
  func.func @_smoothed_nll_kernel(%arg0: i32, %arg1: memref<8x32xf32, #tpu.memory_space<vmem>>, %arg2: memref<8x1xi32, #tpu.memory_space<vmem>>, %arg3: memref<8x1xf32, #tpu.memory_space<vmem>>) attributes {dimension_semantics = [#tpu.dimension_semantics<parallel>], iteration_bounds = array<i64: 1>, scalar_prefetch = 0 : i64, scratch_operands = 0 : i64, tpu.core_type = #tpu.core_type<tc>, window_params = [{transform_indices = @transform_0, window_bounds = array<i64: 8, 32>}, {transform_indices = @transform_1, window_bounds = array<i64: 8, 1>}, {transform_indices = @transform_2, window_bounds = array<i64: 8, 1>}]} {
    %c0 = arith.constant 0 : index
    %c0_0 = arith.constant 0 : index
    %0 = vector.load %arg1[%c0, %c0_0] : memref<8x32xf32, #tpu.memory_space<vmem>>, vector<8x32xf32>
    %c0_1 = arith.constant 0 : index
    %c0_2 = arith.constant 0 : index
    %1 = vector.load %arg2[%c0_1, %c0_2] : memref<8x1xi32, #tpu.memory_space<vmem>>, vector<8x1xi32>
    %cst = arith.constant dense<0xFF800000> : vector<8xf32>
    %2 = vector.multi_reduction <maximumf>, %0, %cst [1] : vector<8x32xf32> to vector<8xf32>
    %3 = vector.shape_cast %2 : vector<8xf32> to vector<8x1xf32>
    %4 = vector.broadcast %3 : vector<8x1xf32> to vector<8x32xf32>
    %5 = arith.subf %0, %4 : vector<8x32xf32>
    %6 = math.exp %5 : vector<8x32xf32>
    %cst_3 = arith.constant dense<0.000000e+00> : vector<8xf32>
    %7 = vector.multi_reduction <add>, %6, %cst_3 [1] : vector<8x32xf32> to vector<8xf32>
    %8 = vector.shape_cast %7 : vector<8xf32> to vector<8x1xf32>
    %9 = math.log %8 : vector<8x1xf32>
    %10 = tpu.iota {dimensions = array<i32: 1>} : vector<8x32xi32>
    %11 = vector.broadcast %1 : vector<8x1xi32> to vector<8x32xi32>
    %12 = arith.cmpi eq, %10, %11 : vector<8x32xi32>
    %cst_4 = arith.constant 0.000000e+00 : f32
    %13 = vector.broadcast %cst_4 : f32 to vector<8x32xf32>
    %14 = arith.select %12, %5, %13 : vector<8x32xi1>, vector<8x32xf32>
    %cst_5 = arith.constant dense<0.000000e+00> : vector<8xf32>
    %15 = vector.multi_reduction <add>, %14, %cst_5 [1] : vector<8x32xf32> to vector<8xf32>
    %16 = vector.shape_cast %15 : vector<8xf32> to vector<8x1xf32>
    %17 = arith.subf %16, %9 : vector<8x1xf32>
    %cst_6 = arith.constant dense<0.000000e+00> : vector<8xf32>
    %18 = vector.multi_reduction <add>, %5, %cst_6 [1] : vector<8x32xf32> to vector<8xf32>
    %19 = vector.shape_cast %18 : vector<8xf32> to vector<8x1xf32>
    %cst_7 = arith.constant 3.200000e+01 : f32
    %20 = vector.broadcast %cst_7 : f32 to vector<8x1xf32>
    %21 = arith.mulf %20, %9 : vector<8x1xf32>
    %22 = arith.subf %19, %21 : vector<8x1xf32>
    %cst_8 = arith.constant 0.899999976 : f32
    %23 = vector.broadcast %cst_8 : f32 to vector<8x1xf32>
    %24 = arith.mulf %23, %17 : vector<8x1xf32>
    %25 = arith.subf %22, %17 : vector<8x1xf32>
    %cst_9 = arith.constant 0.0032258064 : f32
    %26 = vector.broadcast %cst_9 : f32 to vector<8x1xf32>
    %27 = arith.mulf %26, %25 : vector<8x1xf32>
    %28 = arith.addf %24, %27 : vector<8x1xf32>
    %cst_10 = arith.constant 0.000000e+00 : f32
    %29 = vector.broadcast %cst_10 : f32 to vector<8x1xf32>
    %30 = arith.subf %29, %28 : vector<8x1xf32>
    %c0_11 = arith.constant 0 : index
    %c0_12 = arith.constant 0 : index
    %31 = vector.load %arg3[%c0_11, %c0_12] : memref<8x1xf32, #tpu.memory_space<vmem>>, vector<8x1xf32>
    tpu.vector_store %arg3[%c0_11, %c0_12], %30 {strides = array<i32>} : memref<8x1xf32, #tpu.memory_space<vmem>>, vector<8x1xf32>,
    return
  }
  func.func @transform_0(%arg0: i32) -> (i32, i32) {
    %c0_i32 = arith.constant 0 : i32
    %c0_i32_0 = arith.constant 0 : i32
    return %arg0, %c0_i32 : i32, i32
  }
  func.func @transform_1(%arg0: i32) -> (i32, i32) {
    %c0_i32 = arith.constant 0 : i32
    %c0_i32_0 = arith.constant 0 : i32
    return %arg0, %c0_i32 : i32, i32
  }
  func.func @transform_2(%arg0: i32) -> (i32, i32) {
    %c0_i32 = arith.constant 0 : i32
    %c0_i32_0 = arith.constant 0 : i32
    return %arg0, %c0_i32 : i32, i32
  }
}

</mosaic_0001>

<bundles_post_ra>
// kernel: loss_label_smoothing.1
= control target key start
LH: loop header
LB: loop body
LE: loop exit
PB: predicated region body
PF: predicated region fallthrough
CT: control target
= control target key end

     0   :  { %vm13_vm0 = vcmask 261120   ;;  %v58_v1 = vmov 0   ;;  %v25_v7 = vlaneseq  ;;  %vm46_vm2 = vcmask 7168   ;;  %s87_s0 = inlined_call_operand.vmem [shape: f32[8,32], index: 0, kind: input, shape index: {}]   ;;  %s88_s1 = inlined_call_operand.vmem [shape: s32[8,1], index: 1, kind: input, shape index: {}]   ;;  %s89_s2 = inlined_call_operand.vmem [shape: f32[8,1], index: 2, kind: output, shape index: {}]  }
   0x1   :  { %v11_v0 = vld [vmem:[%s87_s0] sm:$0xff]  ;;  %53 = vset.pattern.permute.xlu0 %v58_v1 }
   0x2   :  { %v14_v2 = vsel %vm13_vm0, %v11_v0, -inf  ;;  %v12_v3 = vld [vmem:[%s88_s1] sm:$0xff]  ;;  %v26_v8 = vand.u32 127, %v25_v7 }
   0x3   :  { %15 = vmax.xlane.f32.xlu0 %v14_v2 }
  0x19   :  { %28 = vperm.xlu0 %53, %v12_v3  }
  0x90   :  { %v16_v4 = vpop.xlane.xlu0 %15 }
  0x91   :  { %v17_v5 = vsub.f32 %v11_v0, %v16_v4 }
  0x93   :  { %v18_v6 = vmul.f32 1.442695, %v17_v5  ;;  %v36_v14 = vsel %vm13_vm0, %v17_v5, 0.0 }
  0x95   :  { %54 = vpow2.f32 %v18_v6 }
  0x98   :  { %v29_v9 = vpop.permute.xlu0 %28 }
  0x99   :  { %vm30_vm1 = vcmp.eq.s32.totalorder %v26_v8, %v29_v9 }
  0x9a   :  { %v31_v12 = vsel %vm30_vm1, %v17_v5, 0.0 }
  0x9b   :  { %v32_v13 = vsel %vm13_vm0, %v31_v12, 0.0 }
  0x9f   :  { %v55_v10 = vpop.eup %54 }
  0xa0   :  { %v20_v11 = vsel %vm13_vm0, %v55_v10, 0.0 }
  0xa1   :  { %21 = vadd.xlane.f32.xlu1 %v20_v11 }
  0xa5   :  { %33 = vadd.xlane.f32.xlu1 %v32_v13 }
  0xa9   :  { %37 = vadd.xlane.f32.xlu1 %v36_v14 }
 0x12e   :  { %v22_v15 = vpop.xlane.xlu1 %21 }
 0x12f   :  { %56 = vlog2.f32 %v22_v15 }
 0x132   :  { %v34_v16 = vpop.xlane.xlu1 %33 }
 0x136   :  { %v38_v20 = vpop.xlane.xlu1 %37 }
 0x139   :  { %v57_v17 = vpop.eup %56 }
 0x13a   :  { %v24_v18 = vmul.f32 0.6931472, %v57_v17 }
 0x13c   :  { %v39_v19 = vmul.f32 32.0, %v24_v18  ;;  %v35_v21 = vsub.f32 %v34_v16, %v24_v18 }
 0x13e   :  { %v40_v22 = vsub.f32 %v38_v20, %v39_v19  ;;  %v41_v24 = vmul.f32 0.9, %v35_v21 }
 0x140   :  { %v42_v23 = vsub.f32 %v40_v22, %v35_v21 }
 0x142   :  { %v43_v25 = vmul.f32 0.0032258064, %v42_v23 }
 0x144   :  { %v44_v26 = vadd.f32 %v43_v25, %v41_v24 }
 0x146   :  { %v45_v27 = vsub.f32 0.0, %v44_v26 }
 0x148   :  { %47 = vst.msk [vmem:[%s89_s2] sm:$0xff] %vm46_vm2, %v45_v27 }

</bundles_post_ra>
